<compile_context>
chip_gen: v5e
topology: v5e:2x2
jax: 0.10.0
libtpu: 0.0.40
codegen_flags: <defaults>
</compile_context>

<pallas_src>
import jax
import jax.numpy as jnp
from jax import lax
from jax.experimental import pallas as pl
from jax.experimental.pallas import tpu as pltpu

BN_EPS = 1e-5
_VMEM_LIMIT = 48 * 1024 * 1024   # > v5e 16 MiB default scoped limit, < v7x 64 MiB physical


# ------------------------------- helpers ----------------------------------- #

def _round_up(x, m):
    return ((x + m - 1) // m) * m


def _pick_row_tile(h2):
    # Modest row tiles bound the per-tile accumulator size while keeping per-grid-step
    # overhead amortised; must divide 2H and be even (residual row-pair add).
    for tr in (16, 32, 64, 8, 4, 2):
        if tr <= h2 and h2 % tr == 0:
            return tr
    return h2


def _bn_affine(s, q, gamma, beta, count):
    # Training-mode (biased) BN folded into a per-channel affine:
    #   y = x * scale + shift,  scale = gamma/sqrt(var+eps), shift = beta - mean*scale
    # Variance via E[x^2]-E[x]^2 in one f32 pass (fine at GAN activation scales).
    mean = s / count
    var = jnp.maximum(q / count - mean * mean, 0.0)
    scale = gamma.astype(jnp.float32) * lax.rsqrt(var + BN_EPS)
    shift = beta.astype(jnp.float32) - mean * scale
    return scale, shift


# --------------------- kernel A: 1x1 skip conv + BN1 stats ------------------ #

def _skip_stats_call(x, wsk, bsk, cdt):
    # Skip conv at ORIGINAL resolution (1x1 conv commutes with nearest upsample).
    # BN1 per-image channel sums ride along on the same read of x.
    N, H, W, Cin = x.shape
    Cout = wsk.shape[1]

    def kernel(x_ref, w_ref, b_ref, skip_ref, s_ref, q_ref):
        xf = x_ref[0].astype(jnp.float32)                    # (H, W, Cin)
        x2d = xf.reshape(H * W, Cin)
        s = jnp.dot(x2d.astype(cdt), w_ref[...],
                    preferred_element_type=jnp.float32) + b_ref[...]
        skip_ref[...] = s.reshape(1, H, W, Cout).astype(skip_ref.dtype)
        s_ref[...] = jnp.sum(x2d, axis=0, keepdims=True).reshape(1, 1, 1, Cin)
        q_ref[...] = jnp.sum(x2d * x2d, axis=0, keepdims=True).reshape(1, 1, 1, Cin)

    return pl.pallas_call(
        kernel,
        out_shape=(
            jax.ShapeDtypeStruct((N, H, W, Cout), cdt),
            jax.ShapeDtypeStruct((N, 1, 1, Cin), jnp.float32),
            jax.ShapeDtypeStruct((N, 1, 1, Cin), jnp.float32),
        ),
        grid=(N,),
        in_specs=[
            pl.BlockSpec((1, H, W, Cin), lambda n: (n, 0, 0, 0)),
            pl.BlockSpec((Cin, Cout), lambda n: (0, 0)),
            pl.BlockSpec((1, Cout), lambda n: (0, 0)),
        ],
        out_specs=(
            pl.BlockSpec((1, H, W, Cout), lambda n: (n, 0, 0, 0)),
            pl.BlockSpec((1, 1, 1, Cin), lambda n: (n, 0, 0, 0)),
            pl.BlockSpec((1, 1, 1, Cin), lambda n: (n, 0, 0, 0)),
        ),
        compiler_params=pltpu.CompilerParams(dimension_semantics=("parallel",)),
    )(x, wsk.astype(cdt), bsk.reshape(1, Cout).astype(jnp.float32))


# ------- kernel B: fused bn1+relu+2x-upsample+conv1+bias (+BN2 stats) ------- #

def _conv1_fused_call(x_in, scale1, shift1, w1s, b1, *, W2, Wp, row_tile, cdt):
    # x_in: (N, H, Wp+2, Cin) = raw x, width-doubled and column-padded by the wrapper
    #       (columns [2, 2+2W) hold data; everything else is masked to zero in-kernel).
    # Output h1p: (N, 2H, Wp, Cout) with true conv1 output in columns [1, 2W+1);
    # the zero border columns double as conv2's zero padding.
    N, H, Wxp, Cin = x_in.shape
    Cout = w1s.shape[2]
    H2 = 2 * H
    TR = row_tile
    R = H2 // TR
    assert Wxp == Wp + 2

    def kernel(x_ref, sc_ref, sh_ref, w_ref, b_ref, h_ref, s_ref, q_ref, pad_ref):
        r = pl.program_id(1)

        @pl.when(r == 0)
        def _build_shifted_image():
            # Build once per batch element: bn1-normalised, ReLU'd, row-upsampled,
            # zero-padded image with the three dw column shifts stacked on lanes.
            pad_ref[...] = jnp.zeros_like(pad_ref)
            xf = x_ref[0].astype(jnp.float32)                         # (H, Wp+2, Cin)
            col = lax.broadcasted_iota(jnp.int32, (1, Wxp, 1), 1)
            inside = (col >= 2) & (col < 2 + W2)
            v = jnp.where(inside,
                          jnp.maximum(xf * sc_ref[...] + sh_ref[...], 0.0),
                          0.0).astype(pad_ref.dtype)
            # 2x nearest-neighbour row replication (leading-dim broadcast+merge only).
            u = jnp.broadcast_to(v[:, None], (H, 2, Wxp, Cin)).reshape(H2, Wxp, Cin)
            stacked = jnp.concatenate(
                [u[:, 0:Wp, :], u[:, 1:Wp + 1, :], u[:, 2:Wp + 2, :]], axis=-1)
            pad_ref[pl.ds(1, H2), :, :] = stacked
            # BN2 stat accumulators (output-resident across r).
            s_ref[...] = jnp.zeros_like(s_ref)
            q_ref[...] = jnp.zeros_like(q_ref)

        r0 = r * TR
        if TR % 8 == 0:
            r0 = pl.multiple_of(r0, 8)

        # 3x3 conv as 3 K-stacked MXU dots (K = 3*Cin); value accumulation, one store.
        acc = None
        for dh in range(3):
            lhs = pad_ref[pl.ds(r0 + dh, TR), :, :].reshape(TR * Wp, 3 * Cin)
            d = jnp.dot(lhs, w_ref[dh], preferred_element_type=jnp.float32)
            acc = d if acc is None else acc + d

        acc = (acc + b_ref[...]).reshape(TR, Wp, Cout)
        colq = lax.broadcasted_iota(jnp.int32, (1, Wp, 1), 1)
        valid = (colq >= 1) & (colq <= W2)
        acc = jnp.where(valid, acc, 0.0)                              # zero pad cols
        h_ref[...] = acc.reshape(1, TR, Wp, Cout).astype(h_ref.dtype)
        # BN2 partial sums (masked cols are zero so they do not perturb the sums).
        s_ref[...] += jnp.sum(acc, axis=(0, 1), keepdims=True).reshape(1, 1, 1, Cout)
        q_ref[...] += jnp.sum(acc * acc, axis=(0, 1), keepdims=True).reshape(1, 1, 1, Cout)

    return pl.pallas_call(
        kernel,
        out_shape=(
            jax.ShapeDtypeStruct((N, H2, Wp, Cout), cdt),
            jax.ShapeDtypeStruct((N, 1, 1, Cout), jnp.float32),
            jax.ShapeDtypeStruct((N, 1, 1, Cout), jnp.float32),
        ),
        grid=(N, R),
        in_specs=[
            pl.BlockSpec((1, H, Wxp, Cin), lambda n, r: (n, 0, 0, 0)),  # revisited over r
            pl.BlockSpec((1, Cin), lambda n, r: (0, 0)),
            pl.BlockSpec((1, Cin), lambda n, r: (0, 0)),
            pl.BlockSpec((3, 3 * Cin, Cout), lambda n, r: (0, 0, 0)),
            pl.BlockSpec((1, Cout), lambda n, r: (0, 0)),
        ],
        out_specs=(
            pl.BlockSpec((1, TR, Wp, Cout), lambda n, r: (n, r, 0, 0)),
            pl.BlockSpec((1, 1, 1, Cout), lambda n, r: (n, 0, 0, 0)),   # resident acc
            pl.BlockSpec((1, 1, 1, Cout), lambda n, r: (n, 0, 0, 0)),   # resident acc
        ),
        scratch_shapes=[
            pltpu.VMEM((H2 + 2, Wp, 3 * Cin), cdt),   # pre-shifted padded image
        ],
        compiler_params=pltpu.CompilerParams(
            dimension_semantics=("parallel", "arbitrary"),
            vmem_limit_bytes=_VMEM_LIMIT),
    )(x_in, scale1, shift1, w1s.astype(cdt), b1.reshape(1, Cout).astype(jnp.float32))


# -------- kernel C: fused bn2+relu+conv2+bias + residual skip add ----------- #

def _conv2_fused_call(h1p, skip_wup, scale2, shift2, w2s, b2, *, W2, row_tile, cdt):
    # h1p:      (N, 2H, Wp, Cout) conv1 output; zero border columns = conv2 padding.
    # skip_wup: (N, H, 2W, Cout) skip branch, already width-doubled (tiny tensor);
    #           rows are broadcast in-kernel (up2x of skip is never materialised).
    N, H2, Wp, Cout = h1p.shape
    TR = row_tile
    TRv = TR // 2
    R = H2 // TR

    def kernel(h_ref, k_ref, sc_ref, sh_ref, w_ref, b_ref, o_ref, pad_ref):
        r = pl.program_id(1)

        @pl.when(r == 0)
        def _build_shifted_image():
            pad_ref[...] = jnp.zeros_like(pad_ref)
            hh = h_ref[0].astype(jnp.float32)                         # (2H, Wp, Cout)
            col = lax.broadcasted_iota(jnp.int32, (1, Wp, 1), 1)
            inside = (col >= 1) & (col <= W2)
            v = jnp.where(inside,
                          jnp.maximum(hh * sc_ref[...] + sh_ref[...], 0.0),
                          0.0).astype(pad_ref.dtype)
            stacked = jnp.concatenate(
                [v[:, 0:W2, :], v[:, 1:W2 + 1, :], v[:, 2:W2 + 2, :]], axis=-1)
            pad_ref[pl.ds(1, H2), :, :] = stacked

        r0 = r * TR
        if TR % 8 == 0:
            r0 = pl.multiple_of(r0, 8)

        acc = None
        for dh in range(3):
            lhs = pad_ref[pl.ds(r0 + dh, TR), :, :].reshape(TR * W2, 3 * Cout)
            d = jnp.dot(lhs, w_ref[dh], preferred_element_type=jnp.float32)
            acc = d if acc is None else acc + d

        acc = (acc + b_ref[...]).reshape(TRv, 2, W2, Cout)
        # Residual add: output row pairs 2i, 2i+1 share skip row i (nearest-up of skip).
        acc = acc + k_ref[0].astype(jnp.float32)[:, None, :, :]
        o_ref[...] = acc.reshape(1, TR, W2, Cout).astype(o_ref.dtype)

    return pl.pallas_call(
        kernel,
        out_shape=jax.ShapeDtypeStruct((N, H2, W2, Cout), jnp.float32),
        grid=(N, R),
        in_specs=[
            pl.BlockSpec((1, H2, Wp, Cout), lambda n, r: (n, 0, 0, 0)),  # revisited
            pl.BlockSpec((1, TRv, W2, Cout), lambda n, r: (n, r, 0, 0)),
            pl.BlockSpec((1, Cout), lambda n, r: (0, 0)),
            pl.BlockSpec((1, Cout), lambda n, r: (0, 0)),
            pl.BlockSpec((3, 3 * Cout, Cout), lambda n, r: (0, 0, 0)),
            pl.BlockSpec((1, Cout), lambda n, r: (0, 0)),
        ],
        out_specs=pl.BlockSpec((1, TR, W2, Cout), lambda n, r: (n, r, 0, 0)),
        scratch_shapes=[
            pltpu.VMEM((H2 + 2, W2, 3 * Cout), cdt),
        ],
        compiler_params=pltpu.CompilerParams(
            dimension_semantics=("parallel", "arbitrary"),
            vmem_limit_bytes=_VMEM_LIMIT),
    )(h1p, skip_wup, scale2, shift2, w2s.astype(cdt),
      b2.reshape(1, Cout).astype(jnp.float32))


# ------------------------------ block wrapper ------------------------------ #

def residual_block_up(x_nchw, p, *, compute_dtype=jnp.float32, row_tile=None):
    """ResidualBlockUp forward.  compute_dtype=jnp.bfloat16 is recommended on
    v6e/v7x (bf16 MXU operands, bf16 scratch/intermediates, f32 accumulate/BN)."""
    N, Cin, H, W = x_nchw.shape
    assert W % 8 == 0, "kernel assumes W multiple of 8 (layout-trivial reshapes)"
    Cout = p["b1"].shape[0]
    cdt = compute_dtype
    H2, W2 = 2 * H, 2 * W
    TR = row_tile if row_tile is not None else _pick_row_tile(H2)
    assert H2 % TR == 0 and TR % 2 == 0

    x = jnp.transpose(x_nchw, (0, 2, 3, 1)).astype(jnp.float32)      # NHWC

    # Skip conv at original resolution + BN1 partial sums (single read of x).
    skip, xs, xq = _skip_stats_call(x, p["wskip_k"], p["bskip"], cdt)
    scale1, shift1 = _bn_affine(xs.sum(axis=(0, 1, 2)), xq.sum(axis=(0, 1, 2)),
                                p["gamma1"], p["beta1"], N * H * W)

    # conv1 input: width-doubled raw x (cheap XLA replication of the SMALL tensor),
    # column-padded so the conv1 output width Wp keeps all in-kernel reshapes
    # layout-trivial for both f32 (8) and bf16 (16) sublane tiles.
    Wp = _round_up(W2 + 2, 16)
    x_in = jnp.pad(jnp.repeat(x, 2, axis=2),
                   ((0, 0), (0, 0), (2, Wp - W2), (0, 0)))

    h1p, s2, q2 = _conv1_fused_call(
        x_in, scale1.reshape(1, Cin), shift1.reshape(1, Cin),
        p["w1_k"], p["b1"], W2=W2, Wp=Wp, row_tile=TR, cdt=cdt)
    scale2, shift2 = _bn_affine(s2.sum(axis=(0, 1, 2)), q2.sum(axis=(0, 1, 2)),
                                p["gamma2"], p["beta2"], N * H2 * W2)

    skip_wup = jnp.repeat(skip, 2, axis=2)                           # (N, H, 2W, Cout)
    out = _conv2_fused_call(
        h1p, skip_wup, scale2.reshape(1, Cout), shift2.reshape(1, Cout),
        p["w2_k"], p["b2"], W2=W2, row_tile=TR, cdt=cdt)
    return jnp.transpose(out, (0, 3, 1, 2))                          # NHWC -> NCHW


# ------------------------ parameter preprocessing --------------------------- #

def spectral_normalize(w_oihw, key, n_iter=1, eps=1e-12):
    # torch.nn.utils.spectral_norm equivalent (power iteration on W.reshape(out,-1)).
    # TODO(synk): power-iteration state (u) is synthetic/deterministic, not from a
    # checkpoint; the normalization itself matches 1 iteration of spectral_norm.
    assert n_iter >= 1
    w_mat = w_oihw.reshape(w_oihw.shape[0], -1)
    u = jax.random.normal(key, (w_mat.shape[0],), dtype=jnp.float32)
    u = u / (jnp.linalg.norm(u) + eps)
    v = w_mat.T @ u
    for _ in range(n_iter):
        v = w_mat.T @ u
        v = v / (jnp.linalg.norm(v) + eps)
        u = w_mat @ v
        u = u / (jnp.linalg.norm(u) + eps)
    sigma = jnp.dot(u, w_mat @ v)
    return w_oihw / sigma


def to_w_stacked(w_oihw):
    # (Cout, Cin, 3, 3) -> (3, 3*Cin, Cout): per row-tap dh, K rows ordered dw*Cin + ci,
    # matching the lane-stacked [dw*Cin:(dw+1)*Cin] layout of the conv scratch.
    cout, cin = w_oihw.shape[0], w_oihw.shape[1]
    return jnp.transpose(w_oihw, (2, 3, 1, 0)).reshape(3, 3 * cin, cout)


# ------------------------------ pure-JAX reference -------------------------- #

def reference_forward(x_nchw, p):
    def bn(x, gamma, beta):
        mean = jnp.mean(x, axis=(0, 2, 3), keepdims=True)
        var = jnp.mean((x - mean) ** 2, axis=(0, 2, 3), keepdims=True)
        return ((x - mean) * lax.rsqrt(var + BN_EPS)
                * gamma.reshape(1, -1, 1, 1) + beta.reshape(1, -1, 1, 1))

    def up(x):
        return jnp.repeat(jnp.repeat(x, 2, axis=2), 2, axis=3)

    def conv(x, w, b, pad):
        y = lax.conv_general_dilated(
            x, w, (1, 1), [(pad, pad), (pad, pad)],
            dimension_numbers=("NCHW", "OIHW", "NCHW"),
            precision=lax.Precision.HIGHEST)
        return y + b.reshape(1, -1, 1, 1)

    h = jax.nn.relu(bn(x_nchw, p["gamma1"], p["beta1"]))
    h = up(h)
    h = conv(h, p["w1_sn"], p["b1"], 1)
    h = jax.nn.relu(bn(h, p["gamma2"], p["beta2"]))
    h = conv(h, p["w2_sn"], p["b2"], 1)
    x0 = conv(up(x_nchw), p["wskip_sn"], p["bskip"], 0)
    return h + x0


# ----------------------------------- main ----------------------------------- #

if __name__ == "__main__":
    key = jax.random.PRNGKey(0)
    in_ch, out_ch = 4, 8
    N, H, W = 2, 16, 16

    ks = jax.random.split(key, 12)
    x = jax.random.normal(ks[0], (N, in_ch, H, W), dtype=jnp.float32)

    w1 = 0.1 * jax.random.normal(ks[1], (out_ch, in_ch, 3, 3), jnp.float32)
    b1 = 0.05 * jax.random.normal(ks[2], (out_ch,), jnp.float32)
    w2 = 0.1 * jax.random.normal(ks[3], (out_ch, out_ch, 3, 3), jnp.float32)
    b2 = 0.05 * jax.random.normal(ks[4], (out_ch,), jnp.float32)
    wskip = 0.1 * jax.random.normal(ks[5], (out_ch, in_ch, 1, 1), jnp.float32)
    bskip = 0.05 * jax.random.normal(ks[6], (out_ch,), jnp.float32)
    gamma1 = 1.0 + 0.1 * jax.random.normal(ks[7], (in_ch,), jnp.float32)
    beta1 = 0.1 * jax.random.normal(ks[8], (in_ch,), jnp.float32)
    gamma2 = 1.0 + 0.1 * jax.random.normal(ks[9], (out_ch,), jnp.float32)
    beta2 = 0.1 * jax.random.normal(ks[10], (out_ch,), jnp.float32)

    w1_sn = spectral_normalize(w1, jax.random.fold_in(key, 101))
    w2_sn = spectral_normalize(w2, jax.random.fold_in(key, 102))
    wskip_sn = spectral_normalize(wskip, jax.random.fold_in(key, 103))

    params = dict(
        gamma1=gamma1, beta1=beta1, gamma2=gamma2, beta2=beta2,
        b1=b1, b2=b2, bskip=bskip,
        # kernel-layout weights (K-stacked for the fused conv kernels)
        w1_k=to_w_stacked(w1_sn), w2_k=to_w_stacked(w2_sn),
        wskip_k=jnp.transpose(wskip_sn[:, :, 0, 0]),
        # reference-layout (OIHW) spectrally-normalized weights
        w1_sn=w1_sn, w2_sn=w2_sn, wskip_sn=wskip_sn,
    )

    ref = jax.block_until_ready(reference_forward(x, params))

    # f32 path.  Tolerance leaves headroom for MXU f32-pass differences vs XLA's conv.
    out = jax.block_until_ready(
        residual_block_up(x, params, compute_dtype=jnp.float32))
    assert out.shape == (N, out_ch, 2 * H, 2 * W), out.shape
    err = float(jnp.max(jnp.abs(out - ref)))
    if not err < 2e-2:
        raise AssertionError(f"Pallas/reference mismatch (f32): max abs err = {err}")

    # bf16 path (recommended on v6e/v7x): bf16 operands / scratch / conv1 intermediate,
    # f32 accumulation and BN math; loose tolerance for bf16 rounding.  Note BN2 stats
    # come from the f32 accumulator while normalisation reads the bf16-rounded h1p.
    out_bf16 = jax.block_until_ready(
        residual_block_up(x, params, compute_dtype=jnp.bfloat16))
    err_bf16 = float(jnp.max(jnp.abs(out_bf16 - ref)))
    if not err_bf16 < 2e-1:
        raise AssertionError(f"Pallas/reference mismatch (bf16): max abs err = {err_bf16}")

    print("KERNEL_OK")
</pallas_src>

<mosaic_0001>
module attributes {stable_mosaic.version = 11 : i64} {
  func.func @kernel(%arg0: i32, %arg1: memref<1x16x16x4xf32, #tpu.memory_space<vmem>>, %arg2: memref<4x8xf32, #tpu.memory_space<vmem>>, %arg3: memref<1x8xf32, #tpu.memory_space<vmem>>, %arg4: memref<1x16x16x8xf32, #tpu.memory_space<vmem>>, %arg5: memref<1x1x1x4xf32, #tpu.memory_space<vmem>>, %arg6: memref<1x1x1x4xf32, #tpu.memory_space<vmem>>) attributes {dimension_semantics = [#tpu.dimension_semantics<parallel>], iteration_bounds = array<i64: 2>, scalar_prefetch = 0 : i64, scratch_operands = 0 : i64, tpu.core_type = #tpu.core_type<tc>, window_params = [{transform_indices = @transform_0, window_bounds = array<i64: 1, 16, 16, 4>}, {pipeline_mode = #tpu.pipeline_mode<synchronous>, transform_indices = @transform_1, window_bounds = array<i64: 4, 8>}, {pipeline_mode = #tpu.pipeline_mode<synchronous>, transform_indices = @transform_2, window_bounds = array<i64: 1, 8>}, {transform_indices = @transform_3, window_bounds = array<i64: 1, 16, 16, 8>}, {transform_indices = @transform_4, window_bounds = array<i64: 1, 1, 1, 4>}, {transform_indices = @transform_5, window_bounds = array<i64: 1, 1, 1, 4>}]} {
    %c0 = arith.constant 0 : index
    %c0_0 = arith.constant 0 : index
    %c0_1 = arith.constant 0 : index
    %c0_2 = arith.constant 0 : index
    %0 = vector.load %arg1[%c0, %c0_0, %c0_1, %c0_2] : memref<1x16x16x4xf32, #tpu.memory_space<vmem>>, vector<1x16x16x4xf32>
    %1 = vector.shape_cast %0 : vector<1x16x16x4xf32> to vector<16x16x4xf32>
    %2 = vector.shape_cast %1 : vector<16x16x4xf32> to vector<256x4xf32>
    %c0_3 = arith.constant 0 : index
    %c0_4 = arith.constant 0 : index
    %3 = vector.load %arg2[%c0_3, %c0_4] : memref<4x8xf32, #tpu.memory_space<vmem>>, vector<4x8xf32>
    %cst = arith.constant dense<0.000000e+00> : vector<256x8xf32>
    %4 = tpu.matmul %2, %3, %cst {dimension_numbers = #tpu.dot_dimension_numbers<[1], [0], [0], [1], [0, 0, 1, 1], [], []>} : vector<256x4xf32>, vector<4x8xf32>, vector<256x8xf32> -> vector<256x8xf32>
    %c0_5 = arith.constant 0 : index
    %c0_6 = arith.constant 0 : index
    %5 = vector.load %arg3[%c0_5, %c0_6] : memref<1x8xf32, #tpu.memory_space<vmem>>, vector<1x8xf32>
    %6 = vector.broadcast %5 : vector<1x8xf32> to vector<256x8xf32>
    %7 = arith.addf %4, %6 : vector<256x8xf32>
    %8 = vector.shape_cast %7 : vector<256x8xf32> to vector<1x16x16x8xf32>
    %c0_7 = arith.constant 0 : index
    %c0_8 = arith.constant 0 : index
    %c0_9 = arith.constant 0 : index
    %c0_10 = arith.constant 0 : index
    %9 = vector.load %arg4[%c0_7, %c0_8, %c0_9, %c0_10] : memref<1x16x16x8xf32, #tpu.memory_space<vmem>>, vector<1x16x16x8xf32>
    tpu.vector_store %arg4[%c0_7, %c0_8, %c0_9, %c0_10], %8 {strides = array<i32>} : memref<1x16x16x8xf32, #tpu.memory_space<vmem>>, vector<1x16x16x8xf32>,
    %cst_11 = arith.constant dense<0.000000e+00> : vector<4xf32>
    %10 = vector.multi_reduction <add>, %2, %cst_11 [0] : vector<256x4xf32> to vector<4xf32>
    %11 = vector.shape_cast %10 : vector<4xf32> to vector<1x4xf32>
    %12 = vector.shape_cast %11 : vector<1x4xf32> to vector<1x1x1x4xf32>
    %c0_12 = arith.constant 0 : index
    %c0_13 = arith.constant 0 : index
    %c0_14 = arith.constant 0 : index
    %c0_15 = arith.constant 0 : index
    %13 = vector.load %arg5[%c0_12, %c0_13, %c0_14, %c0_15] : memref<1x1x1x4xf32, #tpu.memory_space<vmem>>, vector<1x1x1x4xf32>
    tpu.vector_store %arg5[%c0_12, %c0_13, %c0_14, %c0_15], %12 {strides = array<i32>} : memref<1x1x1x4xf32, #tpu.memory_space<vmem>>, vector<1x1x1x4xf32>,
    %14 = arith.mulf %2, %2 : vector<256x4xf32>
    %cst_16 = arith.constant dense<0.000000e+00> : vector<4xf32>
    %15 = vector.multi_reduction <add>, %14, %cst_16 [0] : vector<256x4xf32> to vector<4xf32>
    %16 = vector.shape_cast %15 : vector<4xf32> to vector<1x4xf32>
    %17 = vector.shape_cast %16 : vector<1x4xf32> to vector<1x1x1x4xf32>
    %c0_17 = arith.constant 0 : index
    %c0_18 = arith.constant 0 : index
    %c0_19 = arith.constant 0 : index
    %c0_20 = arith.constant 0 : index
    %18 = vector.load %arg6[%c0_17, %c0_18, %c0_19, %c0_20] : memref<1x1x1x4xf32, #tpu.memory_space<vmem>>, vector<1x1x1x4xf32>
    tpu.vector_store %arg6[%c0_17, %c0_18, %c0_19, %c0_20], %17 {strides = array<i32>} : memref<1x1x1x4xf32, #tpu.memory_space<vmem>>, vector<1x1x1x4xf32>,
    return
  }
  func.func @transform_0(%arg0: i32) -> (i32, i32, i32, i32) {
    %c0_i32 = arith.constant 0 : i32
    %c0_i32_0 = arith.constant 0 : i32
    %c0_i32_1 = arith.constant 0 : i32
    %c0_i32_2 = arith.constant 0 : i32
    return %arg0, %c0_i32, %c0_i32_0, %c0_i32_1 : i32, i32, i32, i32
  }
  func.func @transform_1(%arg0: i32) -> (i32, i32) {
    %c0_i32 = arith.constant 0 : i32
    %c0_i32_0 = arith.constant 0 : i32
    %c0_i32_1 = arith.constant 0 : i32
    return %c0_i32, %c0_i32_0 : i32, i32
  }
  func.func @transform_2(%arg0: i32) -> (i32, i32) {
    %c0_i32 = arith.constant 0 : i32
    %c0_i32_0 = arith.constant 0 : i32
    %c0_i32_1 = arith.constant 0 : i32
    return %c0_i32, %c0_i32_0 : i32, i32
  }
  func.func @transform_3(%arg0: i32) -> (i32, i32, i32, i32) {
    %c0_i32 = arith.constant 0 : i32
    %c0_i32_0 = arith.constant 0 : i32
    %c0_i32_1 = arith.constant 0 : i32
    %c0_i32_2 = arith.constant 0 : i32
    return %arg0, %c0_i32, %c0_i32_0, %c0_i32_1 : i32, i32, i32, i32
  }
  func.func @transform_4(%arg0: i32) -> (i32, i32, i32, i32) {
    %c0_i32 = arith.constant 0 : i32
    %c0_i32_0 = arith.constant 0 : i32
    %c0_i32_1 = arith.constant 0 : i32
    %c0_i32_2 = arith.constant 0 : i32
    return %arg0, %c0_i32, %c0_i32_0, %c0_i32_1 : i32, i32, i32, i32
  }
  func.func @transform_5(%arg0: i32) -> (i32, i32, i32, i32) {
    %c0_i32 = arith.constant 0 : i32
    %c0_i32_0 = arith.constant 0 : i32
    %c0_i32_1 = arith.constant 0 : i32
    %c0_i32_2 = arith.constant 0 : i32
    return %arg0, %c0_i32, %c0_i32_0, %c0_i32_1 : i32, i32, i32, i32
  }
}

</mosaic_0001>

<bundles_post_ra>
// kernel: tpu_custom_call.1
= control target key start
LH: loop header
LB: loop body
LE: loop exit
PB: predicated region body
PF: predicated region fallthrough
CT: control target
= control target key end

     0   :  { %11 = vsyncpa [#allocation3], 0  ;;  %s1663_s0 = inlined_call_operand.vmem [shape: f32[2,16,16,4], index: 0, kind: input, shape index: {}]   ;;  %s1664_s1 = inlined_call_operand.vmem [shape: f32[4,8], index: 1, kind: input, shape index: {}]   ;;  %s1665_s2 = inlined_call_operand.vmem [shape: f32[1,8], index: 2, kind: input, shape index: {}]   ;;  %s1666_s3 = inlined_call_operand.vmem [shape: f32[2,16,16,8], index: 3, kind: output, shape index: {0}]   ;;  %s1667_s4 = inlined_call_operand.hbm [shape: f32[2,1,1,4], index: 4, kind: output, shape index: {1}]   ;;  %s1668_s5 = inlined_call_operand.hbm [shape: f32[2,1,1,4], index: 5, kind: output, shape index: {2}]  }
   0x1   :  { %13 = vsyncpa [#allocation3 + $0x1], 0 }
   0x2   :  { %14 = vsyncpa [#allocation5], 0 }
   0x3   :  { %16 = vsyncpa [#allocation5 + $0x1], 0  ;;  %s1066_s18 = smov 0   ;;  %s1068_s19 = smov 0  }
   0x4   :  { %s1070_s20 = smov 0   ;;  %s1072_s21 = smov 0  }
   0x5 LB: > { %s1087_s22 = sadd.s32 4294967295, %s1034_s21   ;;  %s847_s23 = sadd.s32 4294967294, %s1034_s21   ;;  %s1034_s21 = sphi %s1072_s21, %s1686_s21   ;;  %s1030_s20 = sphi %s1070_s20, %s1685_s20   ;;  %s1026_s19 = sphi %s1068_s19, %s1684_s19   ;;  %s1022_s18 = sphi %s1066_s18, %s1683_s18  }
   0x6   : > { %s1091_s24 = sadd.s32 1, %s1034_s21   ;;  %s123_s25 = sadd.s32 1, %s1030_s20 }
   0x7   : > { %s120_s26 = ssub.s32 %s1034_s21, %s1091_s24  ;;  %p133_p0 = scmp.ne.s32.totalorder %s1030_s20, %s1026_s19 }
   0x8   : > { %p121_p1 = scmp.eq.s32.totalorder %s120_s26, 0  ;;  %p134_p2 = scmp.eq.s32.totalorder %s1087_s22, 1 }
   0x9   : > { %p139_p3 = scmp.ne.s32.totalorder %s1026_s19, %s1022_s18  ;;  %p140_p4 = scmp.eq.s32.totalorder %s847_s23, 1 }
   0xa   : > { %s1102_s27 = scalar_select %p121_p1, %s1030_s20, %s123_s25  }
   0xb   : > { %p1104_p5 = por %p134_p2, %p133_p0  ;;  %p1108_p6 = por %p140_p4, %p139_p3 }
   0xc   : > { %p850_p7 = scmp.ge.s32.totalorder %s1034_s21, 1  ;;  %p198_p8 = scmp.lt.s32.totalorder %s1034_s21, 3 }
   0xe   : > { %p199_p9 = pnand %p850_p7, %p198_p8 }
  0x10   : > { %202 = sbr.rel (%p199_p9) target bundleno = 227 (0xe3), region = 32 }
  0x15   : > { %v276_v0 = vld [vmem:[%s1664_s1] sm:$0xf]  ;;  %vm378_vm0 = vcmask 1043456   ;;  %p234_p10 = scmp.lt.s32.totalorder %s1087_s22, 1  ;;  %vm281_vm1 = vcmask 31744   ;;  %vm495_vm2 = vcmask 64512   ;;  %s722_s26 = scalar_lea.hbm %s1667_s4, %s1087_s22 }
  0x16   : > { %893 = vmatpush.msk.msra.mxu2 %vm378_vm0, %v276_v0  ;;  %894 = vmatpush.msk.msra.mxu3 %vm378_vm0, %v276_v0  ;;  %s1524_s17 = sand.u32 1, %s1026_s19   ;;  %s1547_s10 = sshll.u32 %s722_s26, 4  ;;  %vm597_vm3 = vcmask 24576   ;;  %s727_s10 = int_to_ptr.hbm [resolvable:$true] %s1547_s10 }
  0x17   : > { %s1119_s7 = scalar_select %p234_p10, %s1087_s22, 1  ;;  %855 = vmatpush.msk.msra.mxu0 %vm378_vm0, %v276_v0  ;;  %892 = vmatpush.msk.msra.mxu1 %vm378_vm0, %v276_v0 }
  0x18   : > { %s707_s13 = scalar_lea.sflag [#allocation3], %s1524_s17  ;;  %s954_s14 = sshra.s32 %s727_s10, 4  ;;  %s955_s14 = int_to_ptr.hbm [resolvable:$true] %s954_s14 }
  0x19   : > { %s890_s8 = sshll.u32 %s1119_s7, 8  ;;  %s735_s7 = scalar_lea.hbm %s1668_s5, %s1087_s22 }
  0x1a   : > { %s1127_s11 = scalar_lea.vmem %s1663_s0, %s890_s8  ;;  %s1476_s16 = scalar_lea.vmem %s1666_s3, %s890_s8 }
  0x1b   : > { %v260_v1 = vld [vmem:[%s1127_s11 + $0x80] sm:$0xff]  ;;  %v261_v13 = vld [vmem:[%s1127_s11 + $0x88] sm:$0xff]  ;;  %v262_v29 = vld [vmem:[%s1127_s11 + $0x90] sm:$0xff]  ;;  %s227_s8 = scalar_lea.vmem [#allocation2], %s1524_s17  ;;  %s1556_s12 = sshll.u32 %s735_s7, 4  ;;  %s740_s12 = int_to_ptr.hbm [resolvable:$true] %s1556_s12 }
  0x1c   : > { %v268_v2 = vld [vmem:[%s1127_s11 + $0xc0] sm:$0xff]  ;;  %872 = vmatmul.msk.f32.vlgmr.msra.gmra.mxu2 %vm281_vm1, %v260_v1  ;;  %v1134_v4 = vsel %vm281_vm1, %v260_v1, 0.0  ;;  %v615_v5 = vmul.f32 %v260_v1, %v260_v1  ;;  %v1155_v16 = vsel %vm281_vm1, %v261_v13, 0.0  ;;  %v616_v17 = vmul.f32 %v261_v13, %v261_v13  ;;  %v269_v18 = vld [vmem:[%s1127_s11 + $0xc8] sm:$0xff]  ;;  %v270_v34 = vld [vmem:[%s1127_s11 + $0xd0] sm:$0xff]  ;;  %s1545_s9 = sshll.u32 %s227_s8, 4  ;;  %p961_p0 = scmp.lt.s32.totalorder %s955_s14, %s1667_s4  ;;  %s725_s9 = int_to_ptr.vmem [resolvable:$true] %s1545_s9 }
  0x1d   : > { %v244_v3 = vld [vmem:[%s1127_s11] sm:$0xff]  ;;  %880 = vmatmul.msk.f32.vlgmr.msra.gmra.mxu3 %vm281_vm1, %v268_v2  ;;  %v1138_v6 = vsel %vm281_vm1, %v268_v2, 0.0  ;;  %v623_v7 = vmul.f32 %v268_v2, %v268_v2  ;;  %v1163_v21 = vsel %vm281_vm1, %v269_v18, 0.0  ;;  %v624_v22 = vmul.f32 %v269_v18, %v269_v18  ;;  %v245_v23 = vld [vmem:[%s1127_s11 + $0x8] sm:$0xff]  ;;  %v246_v39 = vld [vmem:[%s1127_s11 + $0x10] sm:$0xff]  ;;  %s956_s15 = scalar_lea.hbm %s955_s14, 1 }
  0x1e   : > { %v252_v8 = vld [vmem:[%s1127_s11 + $0x40] sm:$0xff]  ;;  %856 = vmatmul.msk.f32.vlgmr.msra.gmra.mxu0 %vm281_vm1, %v244_v3  ;;  %v528_v9 = vsel %vm281_vm1, %v244_v3, 0.0  ;;  %v599_v10 = vmul.f32 %v244_v3, %v244_v3  ;;  %v1149_v14 = vsel %vm281_vm1, %v615_v5, 0.0  ;;  %v253_v24 = vld [vmem:[%s1127_s11 + $0x48] sm:$0xff]  ;;  %v1168_v25 = vsel %vm281_vm1, %v616_v17, 0.0  ;;  %v254_v44 = vld [vmem:[%s1127_s11 + $0x50] sm:$0xff]  ;;  %p957_p11 = scmp.ne.s32.totalorder %s955_s14, %s956_s15 }
  0x1f   : > { %864 = vmatmul.msk.f32.vlgmr.msra.gmra.mxu1 %vm281_vm1, %v252_v8  ;;  %v1145_v11 = vsel %vm281_vm1, %v252_v8, 0.0  ;;  %v607_v12 = vmul.f32 %v252_v8, %v252_v8  ;;  %v1152_v15 = vsel %vm281_vm1, %v623_v7, 0.0  ;;  %v529_v26 = vsel %vm281_vm1, %v245_v23, 0.0  ;;  %v1204_v49 = vld [vmem:[%s1127_s11 + $0x98] sm:$0xff]  ;;  %v1241_v1 = vld [vmem:[%s1127_s11 + $0xa0] sm:$0xff]  ;;  %s960_s26 = scalar_lea.hbm %s1667_s4, 2 }
  0x20   : > { %v631_v19 = vsel %vm281_vm1, %v599_v10, 0.0  ;;  %v600_v27 = vmul.f32 %v245_v23, %v245_v23  ;;  %v1172_v28 = vsel %vm281_vm1, %v253_v24, 0.0  ;;  %v1176_v30 = vsel %vm281_vm1, %v624_v22, 0.0  ;;  %v1216_v54 = vld [vmem:[%s1127_s11 + $0xd8] sm:$0xff]  ;;  %v1257_v8 = vld [vmem:[%s1127_s11 + $0xe0] sm:$0xff]  ;;  %p958_p12 = pnand %p957_p11, %p1104_p5  ;;  %p962_p1 = scmp.lt.s32.totalorder %s960_s26, %s956_s15 }
  0x21   : > { %v1160_v20 = vsel %vm281_vm1, %v607_v12, 0.0  ;;  %v530_v31 = vadd.f32 %v529_v26, %v528_v9  ;;  %v608_v32 = vmul.f32 %v253_v24, %v253_v24  ;;  %v1179_v33 = vsel %vm281_vm1, %v262_v29, 0.0  ;;  %v1219_v55 = vld [vmem:[%s1127_s11 + $0x18] sm:$0xff]  ;;  %v1269_v17 = vld [vmem:[%s1127_s11 + $0x20] sm:$0xff] }
  0x22   : > { %v632_v35 = vsel %vm281_vm1, %v600_v27, 0.0  ;;  %v617_v36 = vmul.f32 %v262_v29, %v262_v29  ;;  %v1184_v37 = vsel %vm281_vm1, %v270_v34, 0.0  ;;  %v625_v38 = vmul.f32 %v270_v34, %v270_v34  ;;  %v1238_v0 = vld [vmem:[%s1127_s11 + $0x58] sm:$0xff]  ;;  %p959_p13 = pneg %p958_p12  ;;  %p963_p2 = por %p962_p1, %p961_p0 }
  0x23   : > { %v633_v40 = vadd.f32 %v632_v35, %v631_v19  ;;  %v1188_v41 = vsel %vm281_vm1, %v608_v32, 0.0  ;;  %v531_v42 = vsel %vm281_vm1, %v246_v39, 0.0  ;;  %v601_v43 = vmul.f32 %v246_v39, %v246_v39  ;;  %v1292_v35 = vld [vmem:[%s1127_s11 + $0xa8] sm:$0xff] }
  0x24   : > { %873 = vmatmul.msk.f32.gmra.mxu2 %vm281_vm1, %v261_v13  ;;  %v1195_v45 = vsel %vm281_vm1, %v617_v36, 0.0  ;;  %v1198_v46 = vsel %vm281_vm1, %v625_v38, 0.0  ;;  %v532_v47 = vadd.f32 %v531_v42, %v530_v31  ;;  %v1201_v48 = vsel %vm281_vm1, %v254_v44, 0.0  ;;  %p964_p3 = pnand %p963_p2, %p959_p13 }
  0x25   : > { %881 = vmatmul.msk.f32.gmra.mxu3 %vm281_vm1, %v269_v18  ;;  %v634_v50 = vsel %vm281_vm1, %v601_v43, 0.0  ;;  %v609_v51 = vmul.f32 %v254_v44, %v254_v44  ;;  %v1211_v52 = vsel %vm281_vm1, %v1204_v49, 0.0  ;;  %v618_v53 = vmul.f32 %v1204_v49, %v1204_v49  ;;  %v1306_v43 = vld [vmem:[%s1127_s11 + $0xe8] sm:$0xff] }
  0x26   : > { %857 = vmatmul.msk.f32.gmra.mxu0 %vm281_vm1, %v245_v23  ;;  %v635_v56 = vadd.f32 %v634_v50, %v633_v40  ;;  %v1223_v57 = vsel %vm281_vm1, %v1216_v54, 0.0  ;;  %v626_v58 = vmul.f32 %v1216_v54, %v1216_v54  ;;  %v533_v59 = vsel %vm281_vm1, %v1219_v55, 0.0 }
  0x27   : > { %865 = vmatmul.msk.f32.gmra.mxu1 %vm281_vm1, %v253_v24  ;;  %v1230_v60 = vsel %vm281_vm1, %v609_v51, 0.0  ;;  %v1233_v61 = vsel %vm281_vm1, %v618_v53, 0.0  ;;  %v534_v62 = vadd.f32 %v533_v59, %v532_v47  ;;  %v602_v63 = vmul.f32 %v1219_v55, %v1219_v55  ;;  %v1279_v24 = vld [vmem:[%s1127_s11 + $0x60] sm:$0xff]  ;;  %v1309_v47 = vld [vmem:[%s1127_s11 + $0x28] sm:$0xff]  ;;  %v1331_v59 = vld [vmem:[%s1127_s11 + $0xb0] sm:$0xff] }
  0x28   : > { %v1244_v2 = vsel %vm281_vm1, %v626_v58, 0.0  ;;  %v1248_v3 = vsel %vm281_vm1, %v1238_v0, 0.0  ;;  %v610_v5 = vmul.f32 %v1238_v0, %v1238_v0  ;;  %v1254_v7 = vsel %vm281_vm1, %v1241_v1, 0.0  ;;  %v1328_v58 = vld [vmem:[%s1127_s11 + $0x68] sm:$0xff] }
  0x29   : > { %v636_v9 = vsel %vm281_vm1, %v602_v63, 0.0  ;;  %v619_v10 = vmul.f32 %v1241_v1, %v1241_v1  ;;  %v1264_v12 = vsel %vm281_vm1, %v1257_v8, 0.0  ;;  %v627_v13 = vmul.f32 %v1257_v8, %v1257_v8 }
  0x2a   : > { %v637_v18 = vadd.f32 %v636_v9, %v635_v56  ;;  %v1272_v19 = vsel %vm281_vm1, %v610_v5, 0.0  ;;  %v535_v22 = vsel %vm281_vm1, %v1269_v17, 0.0  ;;  %v603_v23 = vmul.f32 %v1269_v17, %v1269_v17 }
  0x2b   : > { %v1282_v26 = vsel %vm281_vm1, %v619_v10, 0.0  ;;  %v1285_v27 = vsel %vm281_vm1, %v627_v13, 0.0  ;;  %v536_v31 = vadd.f32 %v535_v22, %v534_v62  ;;  %v1289_v32 = vsel %vm281_vm1, %v1279_v24, 0.0  ;;  %v1345_v10 = vld [vmem:[%s1127_s11 + $0xf0] sm:$0xff] }
  0x2c   : > { %1671 = vst [vmem:[#allocation8_spill] sm:$0xff] %v1285_v27  ;;  %874 = vmatmul.msk.f32.gmra.mxu2 %vm281_vm1, %v262_v29  ;;  %v638_v36 = vsel %vm281_vm1, %v603_v23, 0.0  ;;  %v611_v38 = vmul.f32 %v1279_v24, %v1279_v24  ;;  %v1301_v40 = vsel %vm281_vm1, %v1292_v35, 0.0  ;;  %v620_v42 = vmul.f32 %v1292_v35, %v1292_v35 }
  0x2d   : > { %882 = vmatmul.msk.f32.gmra.mxu3 %vm281_vm1, %v270_v34  ;;  %v639_v29 = vadd.f32 %v638_v36, %v637_v18  ;;  %v1315_v34 = vsel %vm281_vm1, %v1306_v43, 0.0  ;;  %v628_v50 = vmul.f32 %v1306_v43, %v1306_v43  ;;  %v537_v51 = vsel %vm281_vm1, %v1309_v47, 0.0 }
  0x2e   : > { %858 = vmatmul.msk.f32.gmra.mxu0 %vm281_vm1, %v246_v39  ;;  %1672 = vst [vmem:[#allocation9_spill] sm:$0xff] %v1315_v34  ;;  %v654_v53 = vsel %vm281_vm1, %v611_v38, 0.0  ;;  %v1323_v56 = vsel %vm281_vm1, %v620_v42, 0.0  ;;  %v538_v39 = vadd.f32 %v537_v51, %v536_v31  ;;  %v553_v63 = vsel %vm281_vm1, %v1328_v58, 0.0  ;;  %v1357_v31 = vld [vmem:[%s1127_s11 + $0x30] sm:$0xff]  ;;  %v1372_v34 = vld [vmem:[%s1127_s11 + $0xb8] sm:$0xff] }
  0x2f   : > { %866 = vmatmul.msk.f32.gmra.mxu1 %vm281_vm1, %v254_v44  ;;  %v604_v44 = vmul.f32 %v1309_v47, %v1309_v47  ;;  %v1334_v62 = vsel %vm281_vm1, %v628_v50, 0.0  ;;  %v612_v5 = vmul.f32 %v1328_v58, %v1328_v58  ;;  %v1342_v9 = vsel %vm281_vm1, %v1331_v59, 0.0 }
  0x30   : > { %1673 = vst [vmem:[#allocation10_spill] sm:$0xff] %v1334_v62  ;;  %v621_v18 = vmul.f32 %v1331_v59, %v1331_v59  ;;  %v1352_v22 = vsel %vm281_vm1, %v1345_v10, 0.0  ;;  %v629_v23 = vmul.f32 %v1345_v10, %v1345_v10  ;;  %v539_v42 = vsel %vm281_vm1, %v1357_v31, 0.0 }
  0x31   : > { %v640_v13 = vsel %vm281_vm1, %v604_v44, 0.0  ;;  %1674 = vst [vmem:[#allocation11_spill] sm:$0xff] %v1352_v22  ;;  %v656_v38 = vsel %vm281_vm1, %v612_v5, 0.0  ;;  %v605_v50 = vmul.f32 %v1357_v31, %v1357_v31  ;;  %v540_v22 = vadd.f32 %v539_v42, %v538_v39 }
  0x32   : > { %v641_v36 = vadd.f32 %v640_v13, %v639_v29  ;;  %v1365_v51 = vsel %vm281_vm1, %v621_v18, 0.0  ;;  %v1368_v44 = vsel %vm281_vm1, %v629_v23, 0.0  ;;  %v1375_v29 = vld [vmem:[%s1127_s11 + $0xf8] sm:$0xff]  ;;  %v1383_v13 = vsel %vm281_vm1, %v1372_v34, 0.0 }
  0x33   : > { %1675 = vst [vmem:[#allocation12_spill] sm:$0xff] %v1368_v44  ;;  %v642_v62 = vsel %vm281_vm1, %v605_v50, 0.0  ;;  %v622_v39 = vmul.f32 %v1372_v34, %v1372_v34  ;;  %v1389_v18 = vsel %vm281_vm1, %v1375_v29, 0.0  ;;  %v251_v23 = vld [vmem:[%s1127_s11 + $0x38] sm:$0xff] }
  0x34   : > { %875 = vmatmul.msk.f32.gmra.mxu2 %vm281_vm1, %v1204_v49  ;;  %v643_v5 = vadd.f32 %v642_v62, %v641_v36  ;;  %1676 = vst [vmem:[#allocation13_spill] sm:$0xff] %v1389_v18  ;;  %v630_v49 = vmul.f32 %v1375_v29, %v1375_v29  ;;  %v606_v62 = vmul.f32 %v251_v23, %v251_v23 }
  0x35   : > { %883 = vmatmul.msk.f32.gmra.mxu3 %vm281_vm1, %v1216_v54  ;;  %v541_v54 = vsel %vm281_vm1, %v251_v23, 0.0  ;;  %v676_v36 = vsel %vm281_vm1, %v622_v39, 0.0 }
  0x36   : > { %859 = vmatmul.msk.f32.gmra.mxu0 %vm281_vm1, %v1219_v55  ;;  %v542_v42 = vadd.f32 %v541_v54, %v540_v22  ;;  %v1401_v50 = vsel %vm281_vm1, %v630_v49, 0.0  ;;  %v644_v18 = vsel %vm281_vm1, %v606_v62, 0.0 }
  0x37   : > { %867 = vmatmul.msk.f32.gmra.mxu1 %vm281_vm1, %v1238_v0  ;;  %v645_v44 = vadd.f32 %v644_v18, %v643_v5 }
  0x38   : > { %v544_v55 = vadd.f32 %v1145_v11, %v542_v42  ;;  %v258_v11 = vld [vmem:[%s1127_s11 + $0x70] sm:$0xff] }
  0x39   : > { %v647_v27 = vadd.f32 %v1160_v20, %v645_v44  ;;  %v613_v44 = vmul.f32 %v258_v11, %v258_v11 }
  0x3a   : > { %v546_v0 = vadd.f32 %v1172_v28, %v544_v55 }
  0x3b   : > { %v649_v39 = vadd.f32 %v1188_v41, %v647_v27 }
  0x3c   : > { %876 = vmatmul.msk.f32.gmra.mxu2 %vm281_vm1, %v1241_v1  ;;  %v548_v22 = vadd.f32 %v1201_v48, %v546_v0  ;;  %v259_v1 = vld [vmem:[%s1127_s11 + $0x78] sm:$0xff]  ;;  %v555_v48 = vsel %vm281_vm1, %v258_v11, 0.0  ;;  %s233_s11 = scalar_lea.vmem [#allocation4], %s1524_s17 }
  0x3d   : > { %884 = vmatmul.msk.f32.gmra.mxu3 %vm281_vm1, %v1257_v8  ;;  %v651_v28 = vadd.f32 %v1230_v60, %v649_v39  ;;  %v614_v41 = vmul.f32 %v259_v1, %v259_v1  ;;  %s1554_s22 = sshll.u32 %s233_s11, 4  ;;  %s738_s22 = int_to_ptr.vmem [resolvable:$true] %s1554_s22 }
  0x3e   : > { %860 = vmatmul.msk.f32.gmra.mxu0 %vm281_vm1, %v1269_v17  ;;  %v550_v20 = vadd.f32 %v1248_v3, %v548_v22  ;;  %v658_v17 = vsel %vm281_vm1, %v613_v44, 0.0 }
  0x3f   : > { %868 = vmatmul.msk.f32.gmra.mxu1 %vm281_vm1, %v1279_v24  ;;  %v653_v8 = vadd.f32 %v1272_v19, %v651_v28  ;;  %v557_v24 = vsel %vm281_vm1, %v259_v1, 0.0  ;;  %v660_v19 = vsel %vm281_vm1, %v614_v41, 0.0  ;;  %v1681_v41 = vld [vmem:[#allocation12_spill] sm:$0xff] }
  0x40   : > { %v552_v5 = vadd.f32 %v1289_v32, %v550_v20 }
  0x41   : > { %v655_v18 = vadd.f32 %v654_v53, %v653_v8 }
  0x42   : > { %v554_v27 = vadd.f32 %v553_v63, %v552_v5 }
  0x43   : > { %v657_v3 = vadd.f32 %v656_v38, %v655_v18 }
  0x44   : > { %877 = vmatmul.msk.f32.gmra.mxu2 %vm281_vm1, %v1292_v35  ;;  %v556_v60 = vadd.f32 %v555_v48, %v554_v27  ;;  %v1680_v48 = vld [vmem:[#allocation11_spill] sm:$0xff] }
  0x45   : > { %885 = vmatmul.msk.f32.gmra.mxu3 %vm281_vm1, %v1306_v43  ;;  %v659_v53 = vadd.f32 %v658_v17, %v657_v3 }
  0x46   : > { %861 = vmatmul.msk.f32.gmra.mxu0 %vm281_vm1, %v1309_v47  ;;  %v558_v32 = vadd.f32 %v557_v24, %v556_v60  ;;  %v1682_v24 = vld [vmem:[#allocation13_spill] sm:$0xff] }
  0x47   : > { %869 = vmatmul.msk.f32.gmra.mxu1 %vm281_vm1, %v1328_v58  ;;  %v661_v49 = vadd.f32 %v660_v19, %v659_v53 }
  0x48   : > { %v560_v63 = vadd.f32 %v1134_v4, %v558_v32 }
  0x49   : > { %v663_v54 = vadd.f32 %v1149_v14, %v661_v49 }
  0x4a   : > { %v562_v35 = vadd.f32 %v1155_v16, %v560_v63 }
  0x4b   : > { %v665_v47 = vadd.f32 %v1168_v25, %v663_v54 }
  0x4c   : > { %878 = vmatmul.msk.f32.gmra.mxu2 %vm281_vm1, %v1331_v59  ;;  %v564_v43 = vadd.f32 %v1179_v33, %v562_v35 }
  0x4d   : > { %886 = vmatmul.msk.f32.gmra.mxu3 %vm281_vm1, %v1345_v10  ;;  %v667_v16 = vadd.f32 %v1195_v45, %v665_v47 }
  0x4e   : > { %862 = vmatmul.msk.f32.gmra.mxu0 %vm281_vm1, %v1357_v31  ;;  %v566_v4 = vadd.f32 %v1211_v52, %v564_v43 }
  0x4f   : > { %870 = vmatmul.msk.f32.gmra.mxu1 %vm281_vm1, %v258_v11  ;;  %v669_v58 = vadd.f32 %v1233_v61, %v667_v16 }
  0x50   : > { %v568_v14 = vadd.f32 %v1254_v7, %v566_v4 }
  0x51   : > { %v671_v33 = vadd.f32 %v1282_v26, %v669_v58 }
  0x52   : > { %v570_v59 = vadd.f32 %v1301_v40, %v568_v14 }
  0x53   : > { %v673_v52 = vadd.f32 %v1323_v56, %v671_v33 }
  0x54   : > { %879 = vmatmul.msk.f32.gmra.mxu2 %vm281_vm1, %v1372_v34  ;;  %v572_v25 = vadd.f32 %v1342_v9, %v570_v59  ;;  %v1469_v9 = vld [vmem:[%s1665_s2] ss:$0 sm:$0xff] }
  0x55   : > { %887 = vmatmul.msk.f32.gmra.mxu3 %vm281_vm1, %v1375_v29  ;;  %v675_v61 = vadd.f32 %v1365_v51, %v673_v52 }
  0x56   : > { %863 = vmatmul.msk.f32.gmra.mxu0 %vm281_vm1, %v251_v23  ;;  %v574_v45 = vadd.f32 %v1383_v13, %v572_v25 }
  0x57   : > { %871 = vmatmul.msk.f32.gmra.mxu1 %vm281_vm1, %v259_v1  ;;  %v677_v26 = vadd.f32 %v676_v36, %v675_v61 }
  0x58   : > { %v576_v7 = vadd.f32 %v1138_v6, %v574_v45 }
  0x59   : > { %v679_v34 = vadd.f32 %v1152_v15, %v677_v26 }
  0x5a   : > { %v578_v40 = vadd.f32 %v1163_v21, %v576_v7 }
  0x5b   : > { %v681_v29 = vadd.f32 %v1176_v30, %v679_v34 }
  0x5c   : > { %v580_v62 = vadd.f32 %v1184_v37, %v578_v40  ;;  %v1677_v37 = vld [vmem:[#allocation8_spill] sm:$0xff] }
  0x5d   : > { %v683_v36 = vadd.f32 %v1198_v46, %v681_v29 }
  0x5e   : > { %v582_v0 = vadd.f32 %v1223_v57, %v580_v62  ;;  %v1678_v57 = vld [vmem:[#allocation9_spill] sm:$0xff] }
  0x5f   : > { %v685_v22 = vadd.f32 %v1244_v2, %v683_v36  ;;  %v1679_v2 = vld [vmem:[#allocation10_spill] sm:$0xff] }
  0x60   : > { %v584_v30 = vadd.f32 %v1264_v12, %v582_v0 }
  0x61   : > { %v687_v46 = vadd.f32 %v1677_v37, %v685_v22 }
  0x62   : > { %v586_v44 = vadd.f32 %v1678_v57, %v584_v30 }
  0x63   : > { %v689_v1 = vadd.f32 %v1679_v2, %v687_v46 }
  0x64   : > { %v588_v12 = vadd.f32 %v1680_v48, %v586_v44 }
  0x65   : > { %v691_v27 = vadd.f32 %v1681_v41, %v689_v1 }
  0x66   : > { %v590_v60 = vadd.f32 %v1682_v24, %v588_v12 }
  0x67   : > { %v693_v3 = vadd.f32 %v1401_v50, %v691_v27 }
  0x68   : > { %v591_v19 = vrot.slane %v590_v60, 4 }
  0x69   : > { %v694_v32 = vrot.slane %v693_v3, 4 }
  0x6a   : > { %v592_v54 = vadd.f32 %v591_v19, %v590_v60 }
  0x6b   : > { %v695_v43 = vadd.f32 %v694_v32, %v693_v3 }
  0x6c   : > { %v593_v4 = vrot.slane %v592_v54, 2 }
  0x6d   : > { %v696_v16 = vrot.slane %v695_v43, 2 }
  0x6e   : > { %v594_v59 = vadd.f32 %v593_v4, %v592_v54 }
  0x6f   : > { %v697_v33 = vadd.f32 %v696_v16, %v695_v43 }
  0x70   : > { %v595_v25 = vrot.slane %v594_v59, 1 }
  0x71   : > { %v698_v61 = vrot.slane %v697_v33, 1 }
  0x72   : > { %v596_v40 = vadd.f32 %v595_v25, %v594_v59 }
  0x74   : > { %598 = vst.msk [vmem:[%s227_s8] sm:$0x1] %vm597_vm3, %v596_v40 }
  0x9b   : > { %v399_v6 = vpop.f32.mrf.mxu0 }
  0x9c   : > { %v423_v21 = vpop.f32.mrf.mxu1  ;;  %v400_v15 = vadd.f32 %v1469_v9, %v399_v6 }
  0x9d   : > { %v424_v56 = vadd.f32 %v1469_v9, %v423_v21 }
  0x9e   : > { %496 = vst.msk [vmem:[%s1476_s16] sm:$0xff] %vm495_vm2, %v400_v15 }
  0x9f   : > { %504 = vst.msk [vmem:[%s1476_s16 + $0x40] sm:$0xff] %vm495_vm2, %v424_v56  ;;  %v447_v10 = vpop.f32.mrf.mxu2  ;;  %v699_v56 = vadd.f32 %v698_v61, %v697_v33 }
  0xa0   : > { %v471_v31 = vpop.f32.mrf.mxu3  ;;  %v448_v38 = vadd.f32 %v1469_v9, %v447_v10 }
  0xa1   : > { %v472_v51 = vadd.f32 %v1469_v9, %v471_v31 }
  0xa2   : > { %512 = vst.msk [vmem:[%s1476_s16 + $0x80] sm:$0xff] %vm495_vm2, %v448_v38 }
  0xa3   : > { %v402_v13 = vpop.f32.mrf.mxu0  ;;  %520 = vst.msk [vmem:[%s1476_s16 + $0xc0] sm:$0xff] %vm495_vm2, %v472_v51 }
  0xa4   : > { %v426_v23 = vpop.f32.mrf.mxu1  ;;  %v403_v42 = vadd.f32 %v1469_v9, %v402_v13 }
  0xa5   : > { %v427_v55 = vadd.f32 %v1469_v9, %v426_v23 }
  0xa6   : > { %497 = vst.msk [vmem:[%s1476_s16 + $0x8] sm:$0xff] %vm495_vm2, %v403_v42 }
  0xa7   : > { %505 = vst.msk [vmem:[%s1476_s16 + $0x48] sm:$0xff] %vm495_vm2, %v427_v55  ;;  %v450_v39 = vpop.f32.mrf.mxu2 }
  0xa8   : > { %v474_v11 = vpop.f32.mrf.mxu3  ;;  %v451_v28 = vadd.f32 %v1469_v9, %v450_v39 }
  0xa9   : > { %v475_v20 = vadd.f32 %v1469_v9, %v474_v11 }
  0xaa   : > { %513 = vst.msk [vmem:[%s1476_s16 + $0x88] sm:$0xff] %vm495_vm2, %v451_v28 }
  0xab   : > { %v405_v5 = vpop.f32.mrf.mxu0  ;;  %521 = vst.msk [vmem:[%s1476_s16 + $0xc8] sm:$0xff] %vm495_vm2, %v475_v20 }
  0xac   : > { %v429_v8 = vpop.f32.mrf.mxu1  ;;  %v406_v18 = vadd.f32 %v1469_v9, %v405_v5 }
  0xad   : > { %v430_v17 = vadd.f32 %v1469_v9, %v429_v8 }
  0xae   : > { %498 = vst.msk [vmem:[%s1476_s16 + $0x10] sm:$0xff] %vm495_vm2, %v406_v18 }
  0xaf   : > { %506 = vst.msk [vmem:[%s1476_s16 + $0x50] sm:$0xff] %vm495_vm2, %v430_v17  ;;  %v453_v53 = vpop.f32.mrf.mxu2 }
  0xb0   : > { %v477_v63 = vpop.f32.mrf.mxu3  ;;  %v454_v49 = vadd.f32 %v1469_v9, %v453_v53 }
  0xb1   : > { %v478_v35 = vadd.f32 %v1469_v9, %v477_v63 }
  0xb2   : > { %514 = vst.msk [vmem:[%s1476_s16 + $0x90] sm:$0xff] %vm495_vm2, %v454_v49 }
  0xb3   : > { %v408_v50 = vpop.f32.mrf.mxu0  ;;  %522 = vst.msk [vmem:[%s1476_s16 + $0xd0] sm:$0xff] %vm495_vm2, %v478_v35 }
  0xb4   : > { %v432_v47 = vpop.f32.mrf.mxu1  ;;  %v409_v14 = vadd.f32 %v1469_v9, %v408_v50 }
  0xb5   : > { %v433_v58 = vadd.f32 %v1469_v9, %v432_v47 }
  0xb6   : > { %499 = vst.msk [vmem:[%s1476_s16 + $0x18] sm:$0xff] %vm495_vm2, %v409_v14 }
  0xb7   : > { %507 = vst.msk [vmem:[%s1476_s16 + $0x58] sm:$0xff] %vm495_vm2, %v433_v58  ;;  %v456_v52 = vpop.f32.mrf.mxu2 }
  0xb8   : > { %v480_v45 = vpop.f32.mrf.mxu3  ;;  %v457_v7 = vadd.f32 %v1469_v9, %v456_v52 }
  0xb9   : > { %v481_v26 = vadd.f32 %v1469_v9, %v480_v45 }
  0xba   : > { %515 = vst.msk [vmem:[%s1476_s16 + $0x98] sm:$0xff] %vm495_vm2, %v457_v7 }
  0xbb   : > { %v411_v34 = vpop.f32.mrf.mxu0  ;;  %523 = vst.msk [vmem:[%s1476_s16 + $0xd8] sm:$0xff] %vm495_vm2, %v481_v26 }
  0xbc   : > { %v435_v6 = vpop.f32.mrf.mxu1  ;;  %v412_v21 = vadd.f32 %v1469_v9, %v411_v34 }
  0xbd   : > { %v436_v15 = vadd.f32 %v1469_v9, %v435_v6 }
  0xbe   : > { %500 = vst.msk [vmem:[%s1476_s16 + $0x20] sm:$0xff] %vm495_vm2, %v412_v21 }
  0xbf   : > { %967 = shalt.err (!%p964_p3)
}
  0xc0   : > { %895 = dma.vmem_to_hbm [thread:$0]  (%p1104_p5), %s725_s9, 16, %s727_s10, %s707_s13   ;;  %508 = vst.msk [vmem:[%s1476_s16 + $0x60] sm:$0xff] %vm495_vm2, %v436_v15  ;;  %v459_v10 = vpop.f32.mrf.mxu2  ;;  %v483_v31 = vpop.f32.mrf.mxu3 }
  0xc1   : > { %700 = vst.msk [vmem:[%s233_s11] sm:$0x1] %vm597_vm3, %v699_v56  ;;  %v460_v38 = vadd.f32 %v1469_v9, %v459_v10  ;;  %v484_v51 = vadd.f32 %v1469_v9, %v483_v31  ;;  %s711_s7 = scalar_lea.sflag [#allocation5], %s1524_s17  ;;  %s982_s8 = sshra.s32 %s740_s12, 4  ;;  %s983_s8 = int_to_ptr.hbm [resolvable:$true] %s982_s8 }
  0xc2   : > { %s984_s14 = scalar_lea.hbm %s983_s8, 1  ;;  %s988_s13 = scalar_lea.hbm %s1668_s5, 2 }
  0xc3   : > { %p985_p4 = scmp.ne.s32.totalorder %s983_s8, %s984_s14  ;;  %p989_p9 = scmp.lt.s32.totalorder %s983_s8, %s1668_s5 }
  0xc4   : > { %p990_p10 = scmp.lt.s32.totalorder %s988_s13, %s984_s14 }
  0xc5   : > { %p986_p7 = pnand %p985_p4, %p1104_p5 }
  0xc6   : > { %p991_p11 = por %p990_p10, %p989_p9 }
  0xc7   : > { %p987_p8 = pneg %p986_p7 }
  0xc9   : > { %p992_p12 = pnand %p991_p11, %p987_p8 }
  0xcb   : > { %995 = shalt.err (!%p992_p12)
}
  0xcc   : > { %896 = dma.vmem_to_hbm [thread:$0]  (%p1104_p5), %s738_s22, 16, %s740_s12, %s711_s7   ;;  %516 = vst.msk [vmem:[%s1476_s16 + $0xa0] sm:$0xff] %vm495_vm2, %v460_v38  ;;  %v414_v29 = vpop.f32.mrf.mxu0  ;;  %v438_v13 = vpop.f32.mrf.mxu1 }
  0xcd   : > { %524 = vst.msk [vmem:[%s1476_s16 + $0xe0] sm:$0xff] %vm495_vm2, %v484_v51  ;;  %v415_v23 = vadd.f32 %v1469_v9, %v414_v29  ;;  %v439_v62 = vadd.f32 %v1469_v9, %v438_v13  ;;  %v462_v36 = vpop.f32.mrf.mxu2  ;;  %v486_v42 = vpop.f32.mrf.mxu3 }
  0xce   : > { %v463_v55 = vadd.f32 %v1469_v9, %v462_v36  ;;  %v487_v0 = vadd.f32 %v1469_v9, %v486_v42 }
  0xcf   : > { %501 = vst.msk [vmem:[%s1476_s16 + $0x28] sm:$0xff] %vm495_vm2, %v415_v23 }
  0xd0   : > { %509 = vst.msk [vmem:[%s1476_s16 + $0x68] sm:$0xff] %vm495_vm2, %v439_v62 }
  0xd1   : > { %517 = vst.msk [vmem:[%s1476_s16 + $0xa8] sm:$0xff] %vm495_vm2, %v463_v55 }
  0xd2   : > { %525 = vst.msk [vmem:[%s1476_s16 + $0xe8] sm:$0xff] %vm495_vm2, %v487_v0 }
  0xd4   : > { %v417_v22 = vpop.f32.mrf.mxu0  ;;  %v441_v30 = vpop.f32.mrf.mxu1 }
  0xd5   : > { %v418_v37 = vadd.f32 %v1469_v9, %v417_v22  ;;  %v442_v46 = vadd.f32 %v1469_v9, %v441_v30  ;;  %v465_v39 = vpop.f32.mrf.mxu2  ;;  %v489_v11 = vpop.f32.mrf.mxu3 }
  0xd6   : > { %v466_v28 = vadd.f32 %v1469_v9, %v465_v39  ;;  %v490_v20 = vadd.f32 %v1469_v9, %v489_v11 }
  0xd7   : > { %502 = vst.msk [vmem:[%s1476_s16 + $0x30] sm:$0xff] %vm495_vm2, %v418_v37 }
  0xd8   : > { %510 = vst.msk [vmem:[%s1476_s16 + $0x70] sm:$0xff] %vm495_vm2, %v442_v46 }
  0xd9   : > { %518 = vst.msk [vmem:[%s1476_s16 + $0xb0] sm:$0xff] %vm495_vm2, %v466_v28 }
  0xda   : > { %526 = vst.msk [vmem:[%s1476_s16 + $0xf0] sm:$0xff] %vm495_vm2, %v490_v20 }
  0xdc   : > { %v420_v57 = vpop.f32.mrf.mxu0  ;;  %v444_v44 = vpop.f32.mrf.mxu1 }
  0xdd   : > { %v421_v2 = vadd.f32 %v1469_v9, %v420_v57  ;;  %v445_v1 = vadd.f32 %v1469_v9, %v444_v44  ;;  %v468_v5 = vpop.f32.mrf.mxu2  ;;  %v492_v8 = vpop.f32.mrf.mxu3 }
  0xde   : > { %v469_v48 = vadd.f32 %v1469_v9, %v468_v5  ;;  %v493_v12 = vadd.f32 %v1469_v9, %v492_v8 }
  0xdf   : > { %503 = vst.msk [vmem:[%s1476_s16 + $0x38] sm:$0xff] %vm495_vm2, %v421_v2 }
  0xe0   : > { %511 = vst.msk [vmem:[%s1476_s16 + $0x78] sm:$0xff] %vm495_vm2, %v445_v1 }
  0xe1   : > { %519 = vst.msk [vmem:[%s1476_s16 + $0xb8] sm:$0xff] %vm495_vm2, %v469_v48 }
  0xe2   : > { %527 = vst.msk [vmem:[%s1476_s16 + $0xf8] sm:$0xff] %vm495_vm2, %v493_v12 }
  0xe3 PF: > { %p906_p5 = scmp.ge.s32.totalorder %s1034_s21, 2  ;;  %s759_s28 = sand.u32 1, %s1022_s18  }
  0xe4   : > { %s760_s17 = scalar_lea.sflag [#allocation3], %s759_s28 }
  0xe5   : > { %p900_p13 = pnand %p906_p5, %p1108_p6 }
  0xe7   : > { %p901_p0 = pneg %p900_p13 }
  0xe9   : > { %1013 = dma.done.wait (%p901_p0), %s760_s17, 16  }
  0xea   : > { %1015 = vsyncadd (%p901_p0), %s760_s17, 4294967280  ;;  %s769_s11 = scalar_lea.sflag [#allocation5], %s759_s28 }
  0xeb   : > { %1017 = dma.done.wait (%p901_p0), %s769_s11, 16  }
  0xec   : > { %1019 = vsyncadd (%p901_p0), %s769_s11, 4294967280  ;;  %p19_p1 = scmp.ge.s32.totalorder %s1091_s24, 4   ;;  %s1683_s18 = smov %s1026_s19 }
  0xed   : > { %s1684_s19 = smov %s1030_s20  ;;  %s1685_s20 = smov %s1102_s27 }
  0xee   : > { %s1686_s21 = smov %s1091_s24  ;;  %21 = sbr.rel (!%p19_p1) target bundleno = 5 (0x5), region = 96 }
  0xf3   :  { %774 = vsyncpa [#allocation3], 1 }
  0xf4   :  { %776 = vsyncpa [#allocation3 + $0x1], 1 }
  0xf5   :  { %777 = vsyncpa [#allocation5], 1 }
  0xf6   :  { %779 = vsyncpa [#allocation5 + $0x1], 1 }

</bundles_post_ra>
